<compile_context>
chip_gen: v5e
topology: v5e:2x2
jax: 0.10.0
libtpu: 0.0.40
codegen_flags: <defaults>
</compile_context>

<pallas_src>
import functools

import jax
import jax.numpy as jnp
from jax import lax
from jax.experimental import pallas as pl
from jax.experimental.pallas import tpu as pltpu


def _gau_loss_kernel(idx_ref, sh_ref, th_ref, tinv_ref, out_ref,
                     gram_ss_ref, gram_st_ref, sum_s_ref, sum_t_ref,
                     *, inv_n, n_total, block_n, bf16_matmul):
    # idx_ref (scalar prefetch) is consumed only by the T_inv BlockSpec
    # index_map; the body never reads it.
    del idx_ref

    k = pl.program_id(1)                 # reduction step over the batch axis
    k_last = pl.num_programs(1) - 1

    contract0 = (((0,), (0,)), ((), ()))      # contract the row (batch) axis
    contract_last = (((1,), (1,)), ((), ()))  # contract the last axis of both

    @pl.when(k == 0)
    def _init():
        gram_ss_ref[...] = jnp.zeros_like(gram_ss_ref)
        gram_st_ref[...] = jnp.zeros_like(gram_st_ref)
        sum_s_ref[...] = jnp.zeros_like(sum_s_ref)
        sum_t_ref[...] = jnp.zeros_like(sum_t_ref)

    sh = sh_ref[...].astype(jnp.float32)      # (block_n, dS)
    th = th_ref[...].astype(jnp.float32)      # (block_n, dT)

    # Mask padding rows of the last partial tile (only traced when needed).
    if n_total % block_n != 0:
        base = k * block_n
        rows = lax.broadcasted_iota(jnp.int32, (block_n, 1), 0) + base
        valid = rows < n_total
        sh = jnp.where(valid, sh, 0.0)
        th = jnp.where(valid, th, 0.0)

    # Column sums always accumulate in f32 (mean correction is cancellation-
    # prone), regardless of the matmul operand dtype.
    sum_s_ref[...] += jnp.sum(sh, axis=0, keepdims=True)
    sum_t_ref[...] += jnp.sum(th, axis=0, keepdims=True)

    if bf16_matmul:
        sh_mm = sh.astype(jnp.bfloat16)
        th_mm = th.astype(jnp.bfloat16)
    else:
        sh_mm, th_mm = sh, th

    # Gram accumulators (f32): SH^T SH and SH^T TH via axis-0 contraction,
    # no explicit transposes.
    gram_ss_ref[...] += lax.dot_general(
        sh_mm, sh_mm, contract0, preferred_element_type=jnp.float32)
    gram_st_ref[...] += lax.dot_general(
        sh_mm, th_mm, contract0, preferred_element_type=jnp.float32)

    @pl.when(k == k_last)
    def _finalize():
        sum_s = sum_s_ref[...]                 # (1, dS)
        sum_t = sum_t_ref[...]                 # (1, dT)

        # Cov_ab = Gram_ab - (sum_a^T sum_b) / N   (rank-1 outer products).
        outer_ss = lax.dot_general(sum_s, sum_s, contract0,
                                   preferred_element_type=jnp.float32)
        outer_st = lax.dot_general(sum_s, sum_t, contract0,
                                   preferred_element_type=jnp.float32)
        cov_ss = gram_ss_ref[...] - outer_ss * inv_n      # (dS, dS)
        cov_st = gram_st_ref[...] - outer_st * inv_n      # (dS, dT)

        tinv = tinv_ref[...].astype(jnp.float32)          # (dT, dT)
        tmp = jnp.dot(cov_st, tinv, preferred_element_type=jnp.float32)
        # Cov_cond = Cov_SS - (Cov_ST T_inv) Cov_ST^T via last-axis contraction.
        cov_cond = cov_ss - lax.dot_general(
            tmp, cov_st, contract_last, preferred_element_type=jnp.float32)

        loss = jnp.sum(cov_cond * cov_cond)
        out_ref[...] = jnp.reshape(loss, (1, 1))


def _gau_loss_batched_impl(SH, TH, T_inv, indices, block_n, bf16_matmul):
    """SH: (L, N, dS), TH: (L, N, dT), T_inv: (M, dT, dT), indices: (L,)."""
    L, N, dS = SH.shape
    _, _, dT = TH.shape
    M = T_inv.shape[0]

    # Batch-axis tile: full axis for small N, else 512-row tiles (doc: ~85% of
    # HBM roofline).  Second-to-last block dim must be a multiple of 8 or the
    # full axis.
    if block_n is None:
        block_n = N if N <= 512 else 512
    block_n = max(1, min(int(block_n), N))
    if block_n != N and block_n % 8 != 0:
        block_n = max(8, (block_n // 8) * 8)
    k_steps = pl.cdiv(N, block_n)

    # Clamp layer indices so a bad index can never DMA out of T_inv's range.
    idx = jnp.clip(jnp.asarray(indices, jnp.int32), 0, M - 1).reshape((L,))

    kernel = functools.partial(
        _gau_loss_kernel, inv_n=1.0 / N, n_total=N, block_n=block_n,
        bf16_matmul=bool(bf16_matmul))

    # Explicit VMEM budget: double-buffered SH/TH tiles + T_inv block + scratch.
    in_bytes = jnp.dtype(SH.dtype).itemsize
    vmem_est = (2 * block_n * (dS + dT) * in_bytes
                + 2 * dT * dT * jnp.dtype(T_inv.dtype).itemsize
                + 4 * (dS * (dS + dT) + (dS + dT)) + 64)
    vmem_limit = int(min(48 * 2**20, max(16 * 2**20, 2 * vmem_est)))

    out = pl.pallas_call(
        kernel,
        out_shape=jax.ShapeDtypeStruct((L, 1, 1), jnp.float32),
        grid_spec=pltpu.PrefetchScalarGridSpec(
            num_scalar_prefetch=1,
            grid=(L, k_steps),
            in_specs=[
                # Streamed batch tiles; leading instance axis squeezed.
                pl.BlockSpec((None, block_n, dS),
                             lambda l, k, idx_ref: (l, k, 0)),
                pl.BlockSpec((None, block_n, dT),
                             lambda l, k, idx_ref: (l, k, 0)),
                # One (dT, dT) matrix per instance, selected by the prefetched
                # index; constant across the reduction axis so it is not
                # re-DMA'd per k step.
                pl.BlockSpec((None, dT, dT),
                             lambda l, k, idx_ref: (idx_ref[l], 0, 0)),
            ],
            out_specs=pl.BlockSpec((None, 1, 1),
                                   lambda l, k, idx_ref: (l, 0, 0)),
            scratch_shapes=[
                pltpu.VMEM((dS, dS), jnp.float32),   # Gram_SS accumulator
                pltpu.VMEM((dS, dT), jnp.float32),   # Gram_ST accumulator
                pltpu.VMEM((1, dS), jnp.float32),    # column sums of SH
                pltpu.VMEM((1, dT), jnp.float32),    # column sums of TH
            ],
        ),
        compiler_params=pltpu.CompilerParams(
            # Instance axis parallel (v7x dual-TC), batch reduction arbitrary.
            dimension_semantics=("parallel", "arbitrary"),
            vmem_limit_bytes=vmem_limit),
    )(idx, SH, TH, T_inv)
    return out[:, 0, 0]


@functools.partial(jax.jit, static_argnames=("block_n", "bf16_matmul"))
def gau_loss(SH, TH, T_inv, index, block_n=None, bf16_matmul=False):
    """Pallas implementation of GAULoss.forward(SH, TH, index) -> scalar."""
    idx = jnp.reshape(jnp.asarray(index, jnp.int32), (1,))
    out = _gau_loss_batched_impl(SH[None], TH[None], T_inv, idx,
                                 block_n, bf16_matmul)
    return out[0]


@functools.partial(jax.jit, static_argnames=("block_n", "bf16_matmul"))
def gau_loss_batched(SH, TH, T_inv, indices, block_n=None, bf16_matmul=False):
    """L independent GAULoss instances in one launch.

    SH: (L, N, dS), TH: (L, N, dT), indices: (L,) -> losses (L,)."""
    return _gau_loss_batched_impl(SH, TH, T_inv, indices, block_n, bf16_matmul)


def gau_loss_ref(SH, TH, T_inv, index):
    """Pure-JAX reference (float32) mirroring the PyTorch forward."""
    sh = SH.astype(jnp.float32)
    th = TH.astype(jnp.float32)
    sm = sh.mean(0)
    tm = th.mean(0)
    sc = sh - sm
    tc = th - tm
    cov_st = sc.T @ tc
    cov_cond = sc.T @ sc - cov_st @ T_inv[index] @ cov_st.T
    return jnp.sum(cov_cond * cov_cond)


if __name__ == "__main__":
    key = jax.random.PRNGKey(0)
    k1, k2, k3 = jax.random.split(key, 3)

    n_layers = 3                 # number of teacher covariance matrices
    N, dS, dT = 24, 32, 32       # batch, student hidden, teacher hidden

    SH = jax.random.normal(k1, (N, dS), dtype=jnp.float32)
    TH = jax.random.normal(k2, (N, dT), dtype=jnp.float32)

    # Deterministic synthetic parameters (the module's __init__ loads mean/var
    # from disk; here we build an SPD T per layer and precompute its inverse,
    # the only parameter used in forward; `self.mean` is unused in forward).
    A = jax.random.normal(k3, (n_layers, dT, dT), dtype=jnp.float32)
    T = jnp.einsum("lij,lkj->lik", A, A) + dT * jnp.eye(dT, dtype=jnp.float32)
    T_inv = jnp.linalg.inv(T)

    index = 1

    # Single-instance forward (module semantics); block_n=16 < N=24 exercises
    # the multi-step reduction and the masked partial last tile.
    out = gau_loss(SH, TH, T_inv, index, block_n=16)
    jax.block_until_ready(out)
    ref = gau_loss_ref(SH, TH, T_inv, index)
    assert jnp.allclose(out, ref, rtol=1e-3, atol=1e-2), (out, ref)

    # Batched variant: two (SH, TH, index) instances in one kernel launch.
    k4, k5 = jax.random.split(jax.random.PRNGKey(1), 2)
    SH_b = jax.random.normal(k4, (2, N, dS), dtype=jnp.float32)
    TH_b = jax.random.normal(k5, (2, N, dT), dtype=jnp.float32)
    idx_b = jnp.array([0, 2], dtype=jnp.int32)
    out_b = gau_loss_batched(SH_b, TH_b, T_inv, idx_b)
    jax.block_until_ready(out_b)
    ref_b = jnp.stack([gau_loss_ref(SH_b[i], TH_b[i], T_inv, int(idx_b[i]))
                       for i in range(2)])
    assert jnp.allclose(out_b, ref_b, rtol=1e-3, atol=1e-2), (out_b, ref_b)

    print("KERNEL_OK")
</pallas_src>

<mosaic_0001>
module attributes {stable_mosaic.version = 11 : i64} {
  func.func @_gau_loss_kernel(%arg0: i32, %arg1: i32, %arg2: memref<1xi32, #tpu.memory_space<smem>>, %arg3: memref<1x16x32xf32, #tpu.memory_space<vmem>>, %arg4: memref<1x16x32xf32, #tpu.memory_space<vmem>>, %arg5: memref<1x32x32xf32, #tpu.memory_space<vmem>>, %arg6: memref<1x1x1xf32, #tpu.memory_space<vmem>>, %arg7: memref<32x32xf32, #tpu.memory_space<vmem>>, %arg8: memref<32x32xf32, #tpu.memory_space<vmem>>, %arg9: memref<1x32xf32, #tpu.memory_space<vmem>>, %arg10: memref<1x32xf32, #tpu.memory_space<vmem>>) attributes {dimension_semantics = [#tpu.dimension_semantics<parallel>, #tpu.dimension_semantics<arbitrary>], iteration_bounds = array<i64: 1, 2>, scalar_prefetch = 1 : i64, scratch_operands = 4 : i64, tpu.core_type = #tpu.core_type<tc>, window_params = [{transform_indices = @transform_0, window_bounds = array<i64: 1, 16, 32>}, {transform_indices = @transform_1, window_bounds = array<i64: 1, 16, 32>}, {transform_indices = @transform_2, window_bounds = array<i64: 1, 32, 32>}, {transform_indices = @transform_3, window_bounds = array<i64: 1, 1, 1>}]} {
    %c0_i32 = arith.constant 0 : i32
    %0 = arith.cmpi eq, %arg1, %c0_i32 : i32
    %1 = arith.extui %0 : i1 to i32
    %c0_i32_0 = arith.constant 0 : i32
    %2 = arith.cmpi ne, %1, %c0_i32_0 : i32
    scf.if %2 {
      %cst_28 = arith.constant 0.000000e+00 : f32
      %42 = vector.broadcast %cst_28 : f32 to vector<32x32xf32>
      %c0_29 = arith.constant 0 : index
      %c0_30 = arith.constant 0 : index
      %43 = vector.load %arg7[%c0_29, %c0_30] : memref<32x32xf32, #tpu.memory_space<vmem>>, vector<32x32xf32>
      tpu.vector_store %arg7[%c0_29, %c0_30], %42 {strides = array<i32>} : memref<32x32xf32, #tpu.memory_space<vmem>>, vector<32x32xf32>,
      %cst_31 = arith.constant 0.000000e+00 : f32
      %44 = vector.broadcast %cst_31 : f32 to vector<32x32xf32>
      %c0_32 = arith.constant 0 : index
      %c0_33 = arith.constant 0 : index
      %45 = vector.load %arg8[%c0_32, %c0_33] : memref<32x32xf32, #tpu.memory_space<vmem>>, vector<32x32xf32>
      tpu.vector_store %arg8[%c0_32, %c0_33], %44 {strides = array<i32>} : memref<32x32xf32, #tpu.memory_space<vmem>>, vector<32x32xf32>,
      %cst_34 = arith.constant 0.000000e+00 : f32
      %46 = vector.broadcast %cst_34 : f32 to vector<1x32xf32>
      %c0_35 = arith.constant 0 : index
      %c0_36 = arith.constant 0 : index
      %47 = vector.load %arg9[%c0_35, %c0_36] : memref<1x32xf32, #tpu.memory_space<vmem>>, vector<1x32xf32>
      tpu.vector_store %arg9[%c0_35, %c0_36], %46 {strides = array<i32>} : memref<1x32xf32, #tpu.memory_space<vmem>>, vector<1x32xf32>,
      %cst_37 = arith.constant 0.000000e+00 : f32
      %48 = vector.broadcast %cst_37 : f32 to vector<1x32xf32>
      %c0_38 = arith.constant 0 : index
      %c0_39 = arith.constant 0 : index
      %49 = vector.load %arg10[%c0_38, %c0_39] : memref<1x32xf32, #tpu.memory_space<vmem>>, vector<1x32xf32>
      tpu.vector_store %arg10[%c0_38, %c0_39], %48 {strides = array<i32>} : memref<1x32xf32, #tpu.memory_space<vmem>>, vector<1x32xf32>,
    } else {
    }
    %c0 = arith.constant 0 : index
    %c0_1 = arith.constant 0 : index
    %c0_2 = arith.constant 0 : index
    %3 = vector.load %arg3[%c0, %c0_1, %c0_2] : memref<1x16x32xf32, #tpu.memory_space<vmem>>, vector<1x16x32xf32>
    %4 = vector.shape_cast %3 : vector<1x16x32xf32> to vector<16x32xf32>
    %c0_3 = arith.constant 0 : index
    %c0_4 = arith.constant 0 : index
    %c0_5 = arith.constant 0 : index
    %5 = vector.load %arg4[%c0_3, %c0_4, %c0_5] : memref<1x16x32xf32, #tpu.memory_space<vmem>>, vector<1x16x32xf32>
    %6 = vector.shape_cast %5 : vector<1x16x32xf32> to vector<16x32xf32>
    %c16_i32 = arith.constant 16 : i32
    %7 = arith.muli %arg1, %c16_i32 : i32
    %8 = tpu.iota {dimensions = array<i32: 0>} : vector<16x1xi32>
    %9 = vector.broadcast %7 : i32 to vector<16x1xi32>
    %10 = arith.addi %8, %9 : vector<16x1xi32>
    %c24_i32 = arith.constant 24 : i32
    %11 = vector.broadcast %c24_i32 : i32 to vector<16x1xi32>
    %12 = arith.cmpi slt, %10, %11 : vector<16x1xi32>
    %cst = arith.constant 0.000000e+00 : f32
    %13 = vector.shape_cast %12 : vector<16x1xi1> to vector<16x1xi1>
    %14 = vector.broadcast %13 : vector<16x1xi1> to vector<16x32xi1>
    %15 = vector.broadcast %cst : f32 to vector<16x32xf32>
    %16 = arith.select %14, %4, %15 : vector<16x32xi1>, vector<16x32xf32>
    %cst_6 = arith.constant 0.000000e+00 : f32
    %17 = vector.shape_cast %12 : vector<16x1xi1> to vector<16x1xi1>
    %18 = vector.broadcast %17 : vector<16x1xi1> to vector<16x32xi1>
    %19 = vector.broadcast %cst_6 : f32 to vector<16x32xf32>
    %20 = arith.select %18, %6, %19 : vector<16x32xi1>, vector<16x32xf32>
    %c0_7 = arith.constant 0 : index
    %c0_8 = arith.constant 0 : index
    %21 = vector.load %arg9[%c0_7, %c0_8] : memref<1x32xf32, #tpu.memory_space<vmem>>, vector<1x32xf32>
    %cst_9 = arith.constant dense<0.000000e+00> : vector<32xf32>
    %22 = vector.multi_reduction <add>, %16, %cst_9 [0] : vector<16x32xf32> to vector<32xf32>
    %23 = vector.shape_cast %22 : vector<32xf32> to vector<1x32xf32>
    %24 = arith.addf %21, %23 : vector<1x32xf32>
    %c0_10 = arith.constant 0 : index
    %c0_11 = arith.constant 0 : index
    %25 = vector.load %arg9[%c0_10, %c0_11] : memref<1x32xf32, #tpu.memory_space<vmem>>, vector<1x32xf32>
    tpu.vector_store %arg9[%c0_10, %c0_11], %24 {strides = array<i32>} : memref<1x32xf32, #tpu.memory_space<vmem>>, vector<1x32xf32>,
    %c0_12 = arith.constant 0 : index
    %c0_13 = arith.constant 0 : index
    %26 = vector.load %arg10[%c0_12, %c0_13] : memref<1x32xf32, #tpu.memory_space<vmem>>, vector<1x32xf32>
    %cst_14 = arith.constant dense<0.000000e+00> : vector<32xf32>
    %27 = vector.multi_reduction <add>, %20, %cst_14 [0] : vector<16x32xf32> to vector<32xf32>
    %28 = vector.shape_cast %27 : vector<32xf32> to vector<1x32xf32>
    %29 = arith.addf %26, %28 : vector<1x32xf32>
    %c0_15 = arith.constant 0 : index
    %c0_16 = arith.constant 0 : index
    %30 = vector.load %arg10[%c0_15, %c0_16] : memref<1x32xf32, #tpu.memory_space<vmem>>, vector<1x32xf32>
    tpu.vector_store %arg10[%c0_15, %c0_16], %29 {strides = array<i32>} : memref<1x32xf32, #tpu.memory_space<vmem>>, vector<1x32xf32>,
    %c0_17 = arith.constant 0 : index
    %c0_18 = arith.constant 0 : index
    %31 = vector.load %arg7[%c0_17, %c0_18] : memref<32x32xf32, #tpu.memory_space<vmem>>, vector<32x32xf32>
    %cst_19 = arith.constant dense<0.000000e+00> : vector<32x32xf32>
    %32 = tpu.matmul %16, %16, %cst_19 {dimension_numbers = #tpu.dot_dimension_numbers<[0], [0], [1], [1], [0, 1, 1, 1], [], []>} : vector<16x32xf32>, vector<16x32xf32>, vector<32x32xf32> -> vector<32x32xf32>
    %33 = arith.addf %31, %32 : vector<32x32xf32>
    %c0_20 = arith.constant 0 : index
    %c0_21 = arith.constant 0 : index
    %34 = vector.load %arg7[%c0_20, %c0_21] : memref<32x32xf32, #tpu.memory_space<vmem>>, vector<32x32xf32>
    tpu.vector_store %arg7[%c0_20, %c0_21], %33 {strides = array<i32>} : memref<32x32xf32, #tpu.memory_space<vmem>>, vector<32x32xf32>,
    %c0_22 = arith.constant 0 : index
    %c0_23 = arith.constant 0 : index
    %35 = vector.load %arg8[%c0_22, %c0_23] : memref<32x32xf32, #tpu.memory_space<vmem>>, vector<32x32xf32>
    %cst_24 = arith.constant dense<0.000000e+00> : vector<32x32xf32>
    %36 = tpu.matmul %16, %20, %cst_24 {dimension_numbers = #tpu.dot_dimension_numbers<[0], [0], [1], [1], [0, 1, 1, 1], [], []>} : vector<16x32xf32>, vector<16x32xf32>, vector<32x32xf32> -> vector<32x32xf32>
    %37 = arith.addf %35, %36 : vector<32x32xf32>
    %c0_25 = arith.constant 0 : index
    %c0_26 = arith.constant 0 : index
    %38 = vector.load %arg8[%c0_25, %c0_26] : memref<32x32xf32, #tpu.memory_space<vmem>>, vector<32x32xf32>
    tpu.vector_store %arg8[%c0_25, %c0_26], %37 {strides = array<i32>} : memref<32x32xf32, #tpu.memory_space<vmem>>, vector<32x32xf32>,
    %c1_i32 = arith.constant 1 : i32
    %39 = arith.cmpi eq, %arg1, %c1_i32 : i32
    %40 = arith.extui %39 : i1 to i32
    %c0_i32_27 = arith.constant 0 : i32
    %41 = arith.cmpi ne, %40, %c0_i32_27 : i32
    scf.if %41 {
      %c0_28 = arith.constant 0 : index
      %c0_29 = arith.constant 0 : index
      %42 = vector.load %arg9[%c0_28, %c0_29] : memref<1x32xf32, #tpu.memory_space<vmem>>, vector<1x32xf32>
      %c0_30 = arith.constant 0 : index
      %c0_31 = arith.constant 0 : index
      %43 = vector.load %arg10[%c0_30, %c0_31] : memref<1x32xf32, #tpu.memory_space<vmem>>, vector<1x32xf32>
      %cst_32 = arith.constant dense<0.000000e+00> : vector<32x32xf32>
      %44 = tpu.matmul %42, %42, %cst_32 {dimension_numbers = #tpu.dot_dimension_numbers<[0], [0], [1], [1], [0, 1, 1, 1], [], []>} : vector<1x32xf32>, vector<1x32xf32>, vector<32x32xf32> -> vector<32x32xf32>
      %cst_33 = arith.constant dense<0.000000e+00> : vector<32x32xf32>
      %45 = tpu.matmul %42, %43, %cst_33 {dimension_numbers = #tpu.dot_dimension_numbers<[0], [0], [1], [1], [0, 1, 1, 1], [], []>} : vector<1x32xf32>, vector<1x32xf32>, vector<32x32xf32> -> vector<32x32xf32>
      %c0_34 = arith.constant 0 : index
      %c0_35 = arith.constant 0 : index
      %46 = vector.load %arg7[%c0_34, %c0_35] : memref<32x32xf32, #tpu.memory_space<vmem>>, vector<32x32xf32>
      %cst_36 = arith.constant 0.0416666679 : f32
      %47 = vector.broadcast %cst_36 : f32 to vector<32x32xf32>
      %48 = arith.mulf %44, %47 : vector<32x32xf32>
      %49 = arith.subf %46, %48 : vector<32x32xf32>
      %c0_37 = arith.constant 0 : index
      %c0_38 = arith.constant 0 : index
      %50 = vector.load %arg8[%c0_37, %c0_38] : memref<32x32xf32, #tpu.memory_space<vmem>>, vector<32x32xf32>
      %cst_39 = arith.constant 0.0416666679 : f32
      %51 = vector.broadcast %cst_39 : f32 to vector<32x32xf32>
      %52 = arith.mulf %45, %51 : vector<32x32xf32>
      %53 = arith.subf %50, %52 : vector<32x32xf32>
      %c0_40 = arith.constant 0 : index
      %c0_41 = arith.constant 0 : index
      %c0_42 = arith.constant 0 : index
      %54 = vector.load %arg5[%c0_40, %c0_41, %c0_42] : memref<1x32x32xf32, #tpu.memory_space<vmem>>, vector<1x32x32xf32>
      %55 = vector.shape_cast %54 : vector<1x32x32xf32> to vector<32x32xf32>
      %cst_43 = arith.constant dense<0.000000e+00> : vector<32x32xf32>
      %56 = tpu.matmul %53, %55, %cst_43 {dimension_numbers = #tpu.dot_dimension_numbers<[1], [0], [0], [1], [0, 0, 1, 1], [], []>} : vector<32x32xf32>, vector<32x32xf32>, vector<32x32xf32> -> vector<32x32xf32>
      %cst_44 = arith.constant dense<0.000000e+00> : vector<32x32xf32>
      %57 = tpu.matmul %56, %53, %cst_44 {dimension_numbers = #tpu.dot_dimension_numbers<[1], [1], [0], [0], [0, 0, 1, 0], [], []>} : vector<32x32xf32>, vector<32x32xf32>, vector<32x32xf32> -> vector<32x32xf32>
      %58 = arith.subf %49, %57 : vector<32x32xf32>
      %59 = arith.mulf %58, %58 : vector<32x32xf32>
      %60 = vector.shape_cast %59 : vector<32x32xf32> to vector<1x32x32xf32>
      %cst_45 = arith.constant dense<0.000000e+00> : vector<1xf32>
      %61 = vector.multi_reduction <add>, %60, %cst_45 [1, 2] : vector<1x32x32xf32> to vector<1xf32>
      %62 = vector.shape_cast %61 : vector<1xf32> to vector<1x1x1xf32>
      %63 = vector.extract %62[0, 0, 0] : f32 from vector<1x1x1xf32>
      %64 = vector.broadcast %63 : f32 to vector<1x1xf32>
      %c0_46 = arith.constant 0 : index
      %c0_47 = arith.constant 0 : index
      %c0_48 = arith.constant 0 : index
      %65 = vector.load %arg6[%c0_46, %c0_47, %c0_48] : memref<1x1x1xf32, #tpu.memory_space<vmem>>, vector<1x1x1xf32>
      %66 = vector.shape_cast %65 : vector<1x1x1xf32> to vector<1x1xf32>
      %67 = vector.shape_cast %64 : vector<1x1xf32> to vector<1x1x1xf32>
      tpu.vector_store %arg6[%c0_46, %c0_47, %c0_48], %67 {strides = array<i32>} : memref<1x1x1xf32, #tpu.memory_space<vmem>>, vector<1x1x1xf32>,
    } else {
    }
    return
  }
  func.func @transform_0(%arg0: i32, %arg1: i32, %arg2: memref<1xi32, #tpu.memory_space<smem>>) -> (i32, i32, i32) {
    %c0_i32 = arith.constant 0 : i32
    %c0_i32_0 = arith.constant 0 : i32
    return %arg0, %arg1, %c0_i32 : i32, i32, i32
  }
  func.func @transform_1(%arg0: i32, %arg1: i32, %arg2: memref<1xi32, #tpu.memory_space<smem>>) -> (i32, i32, i32) {
    %c0_i32 = arith.constant 0 : i32
    %c0_i32_0 = arith.constant 0 : i32
    return %arg0, %arg1, %c0_i32 : i32, i32, i32
  }
  func.func @transform_2(%arg0: i32, %arg1: i32, %arg2: memref<1xi32, #tpu.memory_space<smem>>) -> (i32, i32, i32) {
    %0 = arith.index_cast %arg0 : i32 to index
    %1 = memref.load %arg2[%0] : memref<1xi32, #tpu.memory_space<smem>>
    %c0_i32 = arith.constant 0 : i32
    %c0_i32_0 = arith.constant 0 : i32
    %c0_i32_1 = arith.constant 0 : i32
    return %1, %c0_i32, %c0_i32_0 : i32, i32, i32
  }
  func.func @transform_3(%arg0: i32, %arg1: i32, %arg2: memref<1xi32, #tpu.memory_space<smem>>) -> (i32, i32, i32) {
    %c0_i32 = arith.constant 0 : i32
    %c0_i32_0 = arith.constant 0 : i32
    %c0_i32_1 = arith.constant 0 : i32
    return %arg0, %c0_i32, %c0_i32_0 : i32, i32, i32
  }
}

</mosaic_0001>

<bundles_post_ra>
// kernel: gau_loss.1
= control target key start
LH: loop header
LB: loop body
LE: loop exit
PB: predicated region body
PF: predicated region fallthrough
CT: control target
= control target key end

     0   :  { %s1564_s0 = inlined_call_operand.<no memory space> [shape: s32[1], index: 0, kind: input, shape index: {}]   ;;  %s1565_s1 = inlined_call_operand.hbm [shape: f32[1,24,32], index: 1, kind: input, shape index: {}]   ;;  %s1566_s2 = inlined_call_operand.hbm [shape: f32[1,24,32], index: 2, kind: input, shape index: {}]   ;;  %s1567_s3 = inlined_call_operand.hbm [shape: f32[3,32,32], index: 3, kind: input, shape index: {}]   ;;  %s1568_s4 = inlined_call_operand.hbm [shape: f32[1,1,1], index: 4, kind: output, shape index: {}]  }
   0x1   :  { %9 = sst [smem:[#allocation7]] %s1564_s0 }
   0x2   :  { %10 = vsyncpa [#allocation9], 0 }
   0x3   :  { %12 = vsyncpa [#allocation9 + $0x1], 0 }
   0x4   :  { %13 = vsyncpa [#allocation12], 0 }
   0x5   :  { %15 = vsyncpa [#allocation12 + $0x1], 0 }
   0x6   :  { %16 = vsyncpa [#allocation10], 0  ;;  %s1285_s17 = smov 0   ;;  %s1287_s18 = smov 0  }
   0x7   :  { %s1289_s19 = smov 0   ;;  %s1291_s20 = smov 0  }
   0x8   :  { %s1293_s21 = smov 0   ;;  %s1295_s22 = smov 0  }
   0x9   :  { %s1297_s23 = smov 0   ;;  %s1299_s0 = smov 0  }
   0xa LB: > { %s1322_s24 = sadd.s32 4294967295, %s1244_s0   ;;  %s31_s25 = sadd.s32 1, %s1240_s23  ;;  %s1244_s0 = sphi %s1299_s0, %s22_s0   ;;  %s1240_s23 = sphi %s1297_s23, %s1583_s23   ;;  %s1236_s22 = sphi %s1295_s22, %s1582_s22   ;;  %s1232_s21 = sphi %s1293_s21, %s1581_s21   ;;  %s1228_s20 = sphi %s1291_s20, %s1580_s20   ;;  %s1224_s19 = sphi %s1289_s19, %s1579_s19   ;;  %s1220_s18 = sphi %s1287_s18, %s1545_s18   ;;  %s1216_s17 = sphi %s1285_s17, %s1578_s17  }
   0xb   : > { %p32_p0 = scmp.ge.s32.totalorder %s31_s25, 2  ;;  %s43_s26 = sadd.s32 1, %s1232_s21 }
   0xc   : > { %p50_p1 = scmp.ne.s32.totalorder %s1232_s21, %s1228_s20  ;;  %p51_p2 = scmp.eq.s32.totalorder %s1244_s0, 0 }
   0xd   : > { %s1585_s25 = smov (%p32_p0, %s31_s25), 0  ;;  %p56_p4 = scmp.ne.s32.totalorder %s1228_s20, %s1224_s19 }
   0xe   : > { %p1331_p3 = por %p51_p2, %p50_p1  ;;  %s39_s28 = ssub.s32 %s1240_s23, %s1585_s25 }
   0xf   : > { %p57_p5 = scmp.eq.s32.totalorder %s1322_s24, 0  ;;  %p41_p6 = scmp.eq.s32.totalorder %s39_s28, 0 }
  0x10   : > { %s94_s29 = sld [smem:[#allocation7]]  ;;  %p112_p8 = scmp.ne.s32.totalorder %s1220_s18, %s1216_s17 }
  0x11   : > { %p1339_p7 = por %p57_p5, %p56_p4  ;;  %p854_p9 = scmp.ge.s32.totalorder %s1244_s0, 1 }
  0x12   : > { %s1344_s5 = scalar_select %p41_p6, %s1232_s21, %s43_s26  }
  0x13   : > { %p149_p10 = scmp.lt.s32.totalorder %s1244_s0, 3  ;;  %p1349_p11 = por %p112_p8, %p57_p5 }
  0x14   : > { %s1246_s7 = smov [#allocation13]   ;;  %s1033_s28 = scalar_lea.hbm %s1567_s3, 96 }
  0x15   : > { %s166_s8 = sshll.u32 %s1246_s7, 4  ;;  %p1353_p12 = pnand %p854_p9, %p149_p10  ;;  %s167_s8 = int_to_ptr.vmem [resolvable:$true] %s166_s8 }
  0x16   : > { %s916_s10 = sshll.u32 %s94_s29, 5 }
  0x17   : > { %p937_p13 = pneg %p1353_p12  ;;  %s163_s13 = scalar_lea.hbm %s1567_s3, %s916_s10 }
  0x18   : > { %s164_s14 = sshll.u32 %s163_s13, 4  ;;  %s165_s14 = int_to_ptr.hbm [resolvable:$true] %s164_s14 }
  0x19   : > { %p1364_p0 = pnand %p937_p13, %p1349_p11  ;;  %s1026_s16 = sshra.s32 %s165_s14, 4  ;;  %s1027_s16 = int_to_ptr.hbm [resolvable:$true] %s1026_s16 }
  0x1a   : > { %s1028_s17 = scalar_lea.hbm %s1027_s16, 32  ;;  %p1034_p6 = scmp.lt.s32.totalorder %s1027_s16, %s1567_s3 }
  0x1b   : > { %p1029_p1 = scmp.ne.s32.totalorder %s1027_s16, %s1028_s17  ;;  %p1030_p2 = pneg %p1364_p0 }
  0x1c   : > { %p1035_p8 = scmp.lt.s32.totalorder %s1033_s28, %s1028_s17 }
  0x1d   : > { %p1031_p4 = pnand %p1030_p2, %p1029_p1 }
  0x1e   : > { %p1036_p9 = por %p1035_p8, %p1034_p6 }
  0x1f   : > { %p1032_p5 = pneg %p1031_p4 }
  0x21   : > { %p1037_p10 = pnand %p1036_p9, %p1032_p5 }
  0x23   : > { %1040 = shalt.err (!%p1037_p10)
}
  0x24   : > { %s1247_s10 = smov 128   ;;  %s1248_s11 = smov 8  }
  0x25   : > { %940 = dma.hbm_to_vmem [thread:$0]  (!%p1364_p0), %s165_s14, 512, %s167_s8, [#allocation12], %s1247_s10, %s1247_s10, %s1248_s11  }
  0x26   : > { %p857_p13 = scmp.ge.s32.totalorder %s1244_s0, 2 }
  0x28   : > { %176 = sbr.rel (%p857_p13) target bundleno = 118 (0x76), region = 20 }
  0x2d   : > { %179 = sbr.rel (!%p1331_p3) target bundleno = 82 (0x52), region = 24  ;;  %s180_s12 = sand.u32 (%p1331_p3), 1, %s1232_s21  }
  0x2e   : > { %s859_s13 = sshll.u32 (%p1331_p3), %s1240_s23, 1  ;;  %s858_s16 = sshll.u32 (%p1331_p3), %s180_s12, 4 }
  0x2f   : > { %s186_s17 = ssub.s32 (%p1331_p3), 3, %s859_s13  ;;  %s1386_s8 = scalar_lea.sflag (%p1331_p3), [#allocation9], %s180_s12 }
  0x30   : > { %p187_p1 = scmp.lt.s32.totalorder (%p1331_p3), %s186_s17, 2  ;;  %s184_s14 = scalar_lea.vmem (%p1331_p3), [#allocation8], %s858_s16 }
  0x32   : > { %s1587_s17 = smov (!%p187_p1, %s186_s17), 2 }
  0x33   : > { %s860_s19 = sshll.u32 %s1587_s17, 3 }
  0x34   : > { %s190_s26 = ssub.s32 16, %s860_s19 }
  0x35   : > { %s191_s15 = sshll.u32 %s190_s26, 4 }
  0x36   : > { %192 = vsyncadd %s1386_s8, %s191_s15  ;;  %p1389_p0 = scmp.ne.s32.totalorder %s860_s19, 0  ;;  %s917_s29 = sshll.u32 %s1240_s23, 4 }
  0x37   : > { %s197_s11 = scalar_lea.hbm %s1565_s1, %s917_s29  ;;  %s1397_s13 = sshll.u32 %s184_s14, 4  ;;  %s202_s13 = int_to_ptr.vmem [resolvable:$true] %s1397_s13 }
  0x38   : > { %s199_s12 = sshll.u32 %s197_s11, 4  ;;  %s1569_s16 = sshll.u32 %s1587_s17, 7  ;;  %s1400_s12 = int_to_ptr.hbm [resolvable:$true] %s199_s12 }
  0x39   : > { %s1056_s26 = sshra.s32 %s1400_s12, 4  ;;  %s1058_s19 = sshrl.u32 %s1569_s16, 4  ;;  %s1057_s26 = int_to_ptr.hbm [resolvable:$true] %s1056_s26 }
  0x3a   : > { %s1063_s15 = scalar_lea.hbm %s1057_s26, %s1058_s19  ;;  %s1067_s14 = scalar_lea.hbm %s1565_s1, 24 }
  0x3b   : > { %p1064_p2 = scmp.ne.s32.totalorder %s1057_s26, %s1063_s15  ;;  %p1069_p6 = scmp.lt.s32.totalorder %s1067_s14, %s1063_s15 }
  0x3d   : > { %p1065_p4 = pnand %p1064_p2, %p1389_p0 }
  0x3f   : > { %p1066_p5 = pneg %p1065_p4 }
  0x41   : > { %p1071_p8 = pnand %p1069_p6, %p1066_p5 }
  0x43   : > { %1074 = shalt.err (!%p1071_p8)
}
  0x44   : > { %s1075_s10 = sshra.s32 %s202_s13, 4  ;;  %s1249_s26 = smov [#allocation8]   ;;  %s1076_s10 = int_to_ptr.vmem [resolvable:$true] %s1075_s10 }
  0x45   : > { %s1082_s11 = scalar_lea.vmem %s1076_s10, %s1058_s19  ;;  %s1086_s16 = scalar_lea.vmem %s1249_s26, 32 }
  0x46   : > { %p1083_p9 = scmp.ne.s32.totalorder %s1076_s10, %s1082_s11  ;;  %p1088_p1 = scmp.lt.s32.totalorder %s1086_s16, %s1082_s11 }
  0x48   : > { %p1084_p10 = pnand %p1083_p9, %p1389_p0 }
  0x4a   : > { %p1085_p13 = pneg %p1084_p10 }
  0x4c   : > { %p1090_p2 = pnand %p1088_p1, %p1085_p13 }
  0x4e   : > { %1093 = shalt.err (!%p1090_p2)
}
  0x4f   : > { %s1250_s7 = smov 128   ;;  %s1251_s15 = smov 8  }
  0x50   : > { %s1576_s29 = sshll.u32 %s1587_s17, 7 }
  0x51   : > { %207 = dma.hbm_to_vmem [thread:$0]  (%p1389_p0), %s1400_s12, %s1576_s29, %s202_s13, %s1386_s8, %s1250_s7, %s1250_s7, %s1251_s15  }
  0x52 PF: > { %210 = sbr.rel (!%p1331_p3) target bundleno = 118 (0x76), region = 28  ;;  %s211_s16 = sand.u32 (%p1331_p3), 1, %s1244_s0  }
  0x53   : > { %s213_s19 = sand.u32 (%p1331_p3), 1, %s1232_s21   ;;  %s866_s10 = sshll.u32 (%p1331_p3), %s1240_s23, 1 }
  0x54   : > { %s865_s14 = sshll.u32 (%p1331_p3), %s213_s19, 4  ;;  %s217_s11 = ssub.s32 (%p1331_p3), 3, %s866_s10 }
  0x55   : > { %p218_p4 = scmp.lt.s32.totalorder (%p1331_p3), %s217_s11, 2  ;;  %s1431_s8 = scalar_lea.sflag (%p1331_p3), [#allocation12], %s211_s16 }
  0x56   : > { %s215_s27 = scalar_lea.vmem (%p1331_p3), [#allocation11], %s865_s14 }
  0x57   : > { %s1589_s11 = smov (!%p218_p4, %s217_s11), 2 }
  0x58   : > { %s867_s28 = sshll.u32 %s1589_s11, 3 }
  0x59   : > { %s221_s26 = ssub.s32 16, %s867_s28 }
  0x5a   : > { %s222_s17 = sshll.u32 %s221_s26, 4 }
  0x5b   : > { %223 = vsyncadd %s1431_s8, %s222_s17  ;;  %p1434_p3 = scmp.ne.s32.totalorder %s867_s28, 0  ;;  %s918_s12 = sshll.u32 %s1240_s23, 4 }
  0x5c   : > { %s228_s29 = scalar_lea.hbm %s1566_s2, %s918_s12  ;;  %s1442_s19 = sshll.u32 %s215_s27, 4  ;;  %s233_s19 = int_to_ptr.vmem [resolvable:$true] %s1442_s19 }
  0x5d   : > { %s230_s16 = sshll.u32 %s228_s29, 4  ;;  %s871_s14 = sshll.u32 %s1589_s11, 7  ;;  %s1445_s16 = int_to_ptr.hbm [resolvable:$true] %s230_s16 }
  0x5e   : > { %s1095_s10 = sshra.s32 %s1445_s16, 4  ;;  %s1097_s28 = sshrl.u32 %s871_s14, 4  ;;  %s1096_s10 = int_to_ptr.hbm [resolvable:$true] %s1095_s10 }
  0x5f   : > { %s1102_s26 = scalar_lea.hbm %s1096_s10, %s1097_s28  ;;  %s1106_s27 = scalar_lea.hbm %s1566_s2, 24 }
  0x60   : > { %p1103_p0 = scmp.ne.s32.totalorder %s1096_s10, %s1102_s26  ;;  %p1108_p8 = scmp.lt.s32.totalorder %s1106_s27, %s1102_s26 }
  0x62   : > { %p1104_p5 = pnand %p1103_p0, %p1434_p3 }
  0x64   : > { %p1105_p6 = pneg %p1104_p5 }
  0x66   : > { %p1110_p9 = pnand %p1108_p8, %p1105_p6 }
  0x68   : > { %1113 = shalt.err (!%p1110_p9)
}
  0x69   : > { %s1114_s7 = sshra.s32 %s233_s19, 4  ;;  %s1252_s29 = smov [#allocation11]   ;;  %s1115_s7 = int_to_ptr.vmem [resolvable:$true] %s1114_s7 }
  0x6a   : > { %s1121_s15 = scalar_lea.vmem %s1115_s7, %s1097_s28  ;;  %s1125_s10 = scalar_lea.vmem %s1252_s29, 32 }
  0x6b   : > { %p1122_p10 = scmp.ne.s32.totalorder %s1115_s7, %s1121_s15  ;;  %p1127_p2 = scmp.lt.s32.totalorder %s1125_s10, %s1121_s15 }
  0x6d   : > { %p1123_p13 = pnand %p1122_p10, %p1434_p3 }
  0x6f   : > { %p1124_p1 = pneg %p1123_p13 }
  0x71   : > { %p1129_p4 = pnand %p1127_p2, %p1124_p1 }
  0x73   : > { %1132 = shalt.err (!%p1129_p4)
}
  0x74   : > { %s1253_s17 = smov 128   ;;  %s1254_s26 = smov 8  }
  0x75   : > { %238 = dma.hbm_to_vmem [thread:$0]  (%p1434_p3), %s1445_s16, %s871_s14, %s233_s19, %s1431_s8, %s1253_s17, %s1253_s17, %s1254_s26  }
  0x76 PF: > { %244 = sbr.rel (%p1353_p12) target bundleno = 1257 (0x4e9), region = 32  ;;  %s246_s28 = sand.u32 (!%p1353_p12), 1, %s1228_s20  }
  0x77   : > { %s1471_s12 = sshll.u32 (!%p1353_p12), %s246_s28, 4  ;;  %s247_s27 = scalar_lea.sflag (!%p1353_p12), [#allocation9], %s246_s28 }
  0x78   : > { %s250_s7 = scalar_lea.vmem (!%p1353_p12), [#allocation8], %s1471_s12 }
  0x7b   : > { %1199 = dma.done.wait (%p1339_p7), %s247_s27, 256  }
  0x7c   : > { %1201 = vsyncadd (%p1339_p7), %s247_s27, 4294967040  ;;  %s256_s11 = sand.u32 1, %s1322_s24   ;;  %s260_s9 = scalar_lea.vmem [#allocation11], %s1471_s12 }
  0x7d   : > { %s257_s8 = scalar_lea.sflag [#allocation12], %s256_s11 }
  0x7e   : > { %1203 = dma.done.wait (%p1339_p7), %s257_s8, 256  }
  0x7f   : > { %1205 = vsyncadd (%p1339_p7), %s257_s8, 4294967040 }
  0x80   : > { %1207 = dma.done.wait (%p1349_p11), [#allocation12], 512  }
  0x81   : > { %1209 = vsyncadd (%p1349_p11), [#allocation12], 4294966784  ;;  %p875_p12 = scmp.ne.s32.totalorder %s1236_s22, 0 }
  0x83   : > { %303 = sbr.rel (%p875_p12) target bundleno = 147 (0x93), region = 48 }
  0x88   : > { %vm304_vm0 = vcmask 261120   ;;  %v1255_v0 = vmov 0.0   ;;  %vm313_vm1 = vcmask 253952  }
  0x89   : > { %305 = vst.msk [vmem:[#allocation2] sm:$0xff] %vm304_vm0, %v1255_v0 }
  0x8a   : > { %306 = vst.msk [vmem:[#allocation2 + $0x8] sm:$0xff] %vm304_vm0, %v1255_v0 }
  0x8b   : > { %307 = vst.msk [vmem:[#allocation2 + $0x10] sm:$0xff] %vm304_vm0, %v1255_v0 }
  0x8c   : > { %308 = vst.msk [vmem:[#allocation2 + $0x18] sm:$0xff] %vm304_vm0, %v1255_v0 }
  0x8d   : > { %309 = vst.msk [vmem:[#allocation3] sm:$0xff] %vm304_vm0, %v1255_v0 }
  0x8e   : > { %310 = vst.msk [vmem:[#allocation3 + $0x8] sm:$0xff] %vm304_vm0, %v1255_v0 }
  0x8f   : > { %311 = vst.msk [vmem:[#allocation3 + $0x10] sm:$0xff] %vm304_vm0, %v1255_v0 }
  0x90   : > { %312 = vst.msk [vmem:[#allocation3 + $0x18] sm:$0xff] %vm304_vm0, %v1255_v0 }
  0x91   : > { %314 = vst.msk [vmem:[#allocation4] sm:$0x1] %vm313_vm1, %v1255_v0 }
  0x92   : > { %315 = vst.msk [vmem:[#allocation5] sm:$0x1] %vm313_vm1, %v1255_v0 }
  0x93 PF: > { %s876_s30 = sshll.u32 %s1236_s22, 4  ;;  %v321_v1 = vlaneseq  ;;  %v316_v4 = vld [vmem:[%s250_s7] sm:$0xff]  ;;  %v317_v7 = vld [vmem:[%s250_s7 + $0x8] sm:$0xff]  ;;  %vm338_vm3 = vcmask 261120   ;;  %vm349_vm5 = vcmask 253952   ;;  %vm399_vm6 = vcmask 130048  }
  0x94   : > { %v324_v2 = vstv %s876_s30  ;;  %v319_v9 = vld [vmem:[%s260_s9 + $0x8] sm:$0xff]  ;;  %v318_v10 = vld [vmem:[%s260_s9] sm:$0xff]  ;;  %p889_p7 = scmp.ne.s32.totalorder %s1236_s22, 1 }
  0x95   : > { %v322_v3 = vshrl.u32 %v321_v1, 7  ;;  %v363_v41 = vld [vmem:[#allocation2] sm:$0xff]  ;;  %v364_v47 = vld [vmem:[#allocation2 + $0x8] sm:$0xff]  ;;  %v365_v53 = vld [vmem:[#allocation2 + $0x10] sm:$0xff] }
  0x96   : > { %v449_v42 = vld [vmem:[#allocation3] sm:$0xff]  ;;  %v450_v48 = vld [vmem:[#allocation3 + $0x8] sm:$0xff]  ;;  %v451_v54 = vld [vmem:[#allocation3 + $0x10] sm:$0xff] }
  0x97   : > { %v325_v5 = vadd.s32 %v324_v2, %v322_v3  ;;  %v323_v6 = vadd.s32 8, %v322_v3  ;;  %v366_v59 = vld [vmem:[#allocation2 + $0x18] sm:$0xff] }
  0x98   : > { %v337_v31 = vld [vmem:[#allocation4] sm:$0x1]  ;;  %v452_v60 = vld [vmem:[#allocation3 + $0x18] sm:$0xff] }
  0x99   : > { %vm327_vm2 = vcmp.lt.s32.totalorder %v325_v5, 24  ;;  %v326_v8 = vadd.s32 %v324_v2, %v323_v6  ;;  %v351_v32 = vld [vmem:[#allocation5] sm:$0x1] }
  0x9a   : > { %v333_v11 = vsel %vm327_vm2, %v316_v4, 0.0  ;;  %v335_v12 = vsel %vm327_vm2, %v318_v10, 0.0 }
  0x9b   : > { %367 = vxpose.xlu0.b32.start [1/2] (short) (narrow) %v333_v11, 32  ;;  %v339_v13 = vsel %vm338_vm3, %v333_v11, 0.0  ;;  %vm328_vm4 = vcmp.lt.s32.totalorder %v326_v8, 24  ;;  %v352_v14 = vsel %vm338_vm3, %v335_v12, 0.0 }
  0x9c   : > { %v334_v15 = vsel %vm328_vm4, %v317_v7, 0.0  ;;  %877 = vmatpush.msk.msra.mxu0 %vm328_vm4, %v317_v7  ;;  %v336_v16 = vsel %vm328_vm4, %v319_v9, 0.0  ;;  %883 = vmatpush.msk.msra.mxu1 %vm328_vm4, %v319_v9 }
  0x9d   : > { %v340_v17 = vsel %vm338_vm3, %v334_v15, 0.0  ;;  %v353_v18 = vsel %vm338_vm3, %v336_v16, 0.0  ;;  %919 = vmatpush.msk.msra.mxu2 %vm328_vm4, %v317_v7  ;;  %921 = vmatpush.msk.msra.mxu3 %vm328_vm4, %v319_v9 }
  0x9e   : > { %v341_v19 = vadd.f32 %v340_v17, %v339_v13  ;;  %878 = vmatpush.msk.msra.mxu0 %vm327_vm2, %v316_v4  ;;  %v354_v20 = vadd.f32 %v353_v18, %v352_v14  ;;  %884 = vmatpush.msk.msra.mxu1 %vm327_vm2, %v318_v10 }
  0x9f   : > { %920 = vmatpush.msk.msra.mxu2 %vm327_vm2, %v316_v4  ;;  %922 = vmatpush.msk.msra.mxu3 %vm327_vm2, %v318_v10 }
  0xa0   : > { %v342_v21 = vrot.slane %v341_v19, 4  ;;  %v355_v22 = vrot.slane %v354_v20, 4 }
  0xa2   : > { %v343_v23 = vadd.f32 %v342_v21, %v341_v19  ;;  %v356_v24 = vadd.f32 %v355_v22, %v354_v20 }
  0xa3   : > { %368 = vxpose.xlu0.b32.end [2/2] (short) (narrow) %v334_v15, 32 }
  0xa4   : > { %v344_v25 = vrot.slane %v343_v23, 2  ;;  %v357_v26 = vrot.slane %v356_v24, 2 }
  0xa6   : > { %v345_v27 = vadd.f32 %v344_v25, %v343_v23  ;;  %v358_v28 = vadd.f32 %v357_v26, %v356_v24 }
  0xa8   : > { %v346_v29 = vrot.slane %v345_v27, 1  ;;  %v359_v30 = vrot.slane %v358_v28, 1 }
  0xaa   : > { %v347_v33 = vadd.f32 %v346_v29, %v345_v27  ;;  %v360_v34 = vadd.f32 %v359_v30, %v358_v28 }
  0xac   : > { %v348_v35 = vadd.f32 %v347_v33, %v337_v31  ;;  %v361_v36 = vadd.f32 %v360_v34, %v351_v32 }
  0xae   : > { %350 = vst.msk [vmem:[#allocation4] sm:$0x1] %vm349_vm5, %v348_v35 }
  0xaf   : > { %362 = vst.msk [vmem:[#allocation5] sm:$0x1] %vm349_vm5, %v361_v36 }
 0x13f   : > { %v383_v37 = vpop.trf.xlu0 }
 0x140   : > { %879 = vmatmul.msk.f32.vlgmr.msra.gmra.mxu0 %vm399_vm6, %v383_v37  ;;  %885 = vmatmul.msk.f32.vlgmr.msra.gmra.mxu1 %vm399_vm6, %v383_v37 }
 0x147   : > { %v384_v38 = vpop.trf.xlu0 }
 0x148   : > { %880 = vmatmul.msk.f32.gmra.mxu0 %vm399_vm6, %v384_v38  ;;  %886 = vmatmul.msk.f32.gmra.mxu1 %vm399_vm6, %v384_v38 }
 0x14f   : > { %v385_v39 = vpop.trf.xlu0 }
 0x150   : > { %881 = vmatmul.msk.f32.vlgmr.msra.gmra.mxu2 %vm399_vm6, %v385_v39  ;;  %887 = vmatmul.msk.f32.vlgmr.msra.gmra.mxu3 %vm399_vm6, %v385_v39 }
 0x157   : > { %v386_v40 = vpop.trf.xlu0 }
 0x158   : > { %882 = vmatmul.msk.f32.gmra.mxu2 %vm399_vm6, %v386_v40  ;;  %888 = vmatmul.msk.f32.gmra.mxu3 %vm399_vm6, %v386_v40 }
 0x1bd   : > { %v429_v43 = vpop.f32.mrf.mxu0  ;;  %v470_v44 = vpop.f32.mrf.mxu1 }
 0x1be   : > { %v441_v45 = vadd.f32 %v429_v43, %v363_v41  ;;  %v482_v46 = vadd.f32 %v470_v44, %v449_v42 }
 0x1c0   : > { %445 = vst.msk [vmem:[#allocation2] sm:$0xff] %vm338_vm3, %v441_v45 }
 0x1c1   : > { %486 = vst.msk [vmem:[#allocation3] sm:$0xff] %vm338_vm3, %v482_v46 }
 0x1c5   : > { %v432_v49 = vpop.f32.mrf.mxu0  ;;  %v473_v50 = vpop.f32.mrf.mxu1 }
 0x1c6   : > { %v442_v51 = vadd.f32 %v432_v49, %v364_v47  ;;  %v483_v52 = vadd.f32 %v473_v50, %v450_v48 }
 0x1c8   : > { %446 = vst.msk [vmem:[#allocation2 + $0x8] sm:$0xff] %vm338_vm3, %v442_v51 }
 0x1c9   : > { %487 = vst.msk [vmem:[#allocation3 + $0x8] sm:$0xff] %vm338_vm3, %v483_v52 }
 0x1d3   : > { %v435_v55 = vpop.f32.mrf.mxu2  ;;  %v476_v56 = vpop.f32.mrf.mxu3 }
 0x1d4   : > { %v443_v57 = vadd.f32 %v435_v55, %v365_v53  ;;  %v484_v58 = vadd.f32 %v476_v56, %v451_v54 }
 0x1d6   : > { %447 = vst.msk [vmem:[#allocation2 + $0x10] sm:$0xff] %vm338_vm3, %v443_v57 }
 0x1d7   : > { %488 = vst.msk [vmem:[#allocation3 + $0x10] sm:$0xff] %vm338_vm3, %v484_v58 }
 0x1db   : > { %v438_v61 = vpop.f32.mrf.mxu2  ;;  %v479_v62 = vpop.f32.mrf.mxu3  ;;  %493 = sbr.rel (%p889_p7) target bundleno = 1251 (0x4e3), region = 52 }
 0x1dc   : > { %v444_v63 = vadd.f32 %v438_v61, %v366_v59  ;;  %v485_v0 = vadd.f32 %v479_v62, %v452_v60 }
 0x1de   : > { %448 = vst.msk [vmem:[#allocation2 + $0x18] sm:$0xff] %vm338_vm3, %v444_v63 }
 0x1df   : > { %489 = vst.msk [vmem:[#allocation3 + $0x18] sm:$0xff] %vm338_vm3, %v485_v0 }
 0x1e0   : > { %v494_v1 = vld [vmem:[#allocation4] sm:$0x1]  ;;  %v495_v2 = vld [vmem:[#allocation5] sm:$0x1]  ;;  %vm541_vm7 = vcmask 1040384   ;;  %vm528_vm8 = vcmask 7168  }
 0x1e1   : > { %496 = vxpose.xlu0.b32.start.end [1/1] (short) (narrow) %v494_v1, 32  ;;  %895 = vmatpush.msk.msra.mxu1 %vm541_vm7, %v495_v2  ;;  %v633_v3 = vld [vmem:[#allocation13 + $0x18] sm:$0xff]  ;;  %v632_v8 = vld [vmem:[#allocation13 + $0x10] sm:$0xff]  ;;  %v631_v9 = vld [vmem:[#allocation13 + $0x8] sm:$0xff]  ;;  %vm741_vm9 = vcmask 0  }
 0x1e2   : > { %890 = vmatpush.msk.msra.mxu0 %vm541_vm7, %v494_v1  ;;  %658 = vmatpush.msra.mxu2 %v633_v3  ;;  %v630_v10 = vld [vmem:[#allocation13] sm:$0xff]  ;;  %v620_v20 = vld [vmem:[#allocation3 + $0x10] sm:$0xff] }
 0x1e3   : > { %v618_v12 = vld [vmem:[#allocation3] sm:$0xff]  ;;  %v619_v16 = vld [vmem:[#allocation3 + $0x8] sm:$0xff]  ;;  %v608_v41 = vld [vmem:[#allocation2 + $0x10] sm:$0xff] }
 0x1e4   : > { %659 = vmatpush.msra.mxu2 %v632_v8  ;;  %v607_v37 = vld [vmem:[#allocation2 + $0x8] sm:$0xff]  ;;  %v606_v40 = vld [vmem:[#allocation2] sm:$0xff] }
 0x1e5   : > { %v609_v52 = vld [vmem:[#allocation2 + $0x18] sm:$0xff] }
 0x1e6   : > { %660 = vmatpush.msra.mxu2 %v631_v9  ;;  %v621_v24 = vld [vmem:[#allocation3 + $0x18] sm:$0xff] }
 0x1e8   : > { %661 = vmatpush.msra.mxu2 %v630_v10 }
 0x285   : > { %v512_v4 = vpop.trf.xlu0 }
 0x286   : > { %891 = vmatmul.msk.f32.vlgmr.msra.gmra.mxu0 %vm528_vm8, %v512_v4  ;;  %896 = vmatmul.msk.f32.vlgmr.msra.gmra.mxu1 %vm528_vm8, %v512_v4 }
 0x28d   : > { %v513_v5 = vpop.trf.xlu0 }
 0x28e   : > { %892 = vmatmul.msk.f32.gmra.mxu0 %vm528_vm8, %v513_v5  ;;  %897 = vmatmul.msk.f32.gmra.mxu1 %vm528_vm8, %v513_v5 }
 0x295   : > { %v514_v6 = vpop.trf.xlu0 }
 0x296   : > { %893 = vmatmul.msk.f32.gmra.mxu0 %vm528_vm8, %v514_v6  ;;  %898 = vmatmul.msk.f32.gmra.mxu1 %vm528_vm8, %v514_v6 }
 0x29d   : > { %v515_v7 = vpop.trf.xlu0 }
 0x29e   : > { %894 = vmatmul.msk.f32.gmra.mxu0 %vm528_vm8, %v515_v7  ;;  %899 = vmatmul.msk.f32.gmra.mxu1 %vm528_vm8, %v515_v7 }
 0x303   : > { %v594_v11 = vpop.f32.mrf.mxu1  ;;  %v562_v31 = vpop.f32.mrf.mxu0 }
 0x304   : > { %v622_v13 = vmul.f32 0.041666668, %v594_v11  ;;  %v610_v38 = vmul.f32 0.041666668, %v562_v31 }
 0x306   : > { %v626_v14 = vsub.f32 %v618_v12, %v622_v13  ;;  %v614_v44 = vsub.f32 %v606_v40, %v610_v38 }
 0x308   : > { %900 = vmatmul.msk.f32.vlgmr.msra.gmra.mxu2 %vm338_vm3, %v626_v14 }
 0x30b   : > { %v597_v15 = vpop.f32.mrf.mxu1  ;;  %v565_v32 = vpop.f32.mrf.mxu0 }
 0x30c   : > { %v623_v17 = vmul.f32 0.041666668, %v597_v15  ;;  %v611_v36 = vmul.f32 0.041666668, %v565_v32 }
 0x30e   : > { %v627_v18 = vsub.f32 %v619_v16, %v623_v17  ;;  %v615_v42 = vsub.f32 %v607_v37, %v611_v36 }
 0x310   : > { %901 = vmatmul.msk.f32.gmra.mxu2 %vm338_vm3, %v627_v18 }
 0x313   : > { %v600_v19 = vpop.f32.mrf.mxu1  ;;  %v568_v33 = vpop.f32.mrf.mxu0 }
 0x314   : > { %v624_v21 = vmul.f32 0.041666668, %v600_v19  ;;  %v612_v39 = vmul.f32 0.041666668, %v568_v33 }
 0x316   : > { %v628_v22 = vsub.f32 %v620_v20, %v624_v21  ;;  %v616_v46 = vsub.f32 %v608_v41, %v612_v39 }
 0x318   : > { %902 = vmatmul.msk.f32.gmra.mxu2 %vm338_vm3, %v628_v22 }
 0x31b   : > { %v603_v23 = vpop.f32.mrf.mxu1  ;;  %v571_v34 = vpop.f32.mrf.mxu0 }
 0x31c   : > { %v625_v25 = vmul.f32 0.041666668, %v603_v23  ;;  %v613_v50 = vmul.f32 0.041666668, %v571_v34 }
 0x31e   : > { %v629_v26 = vsub.f32 %v621_v24, %v625_v25  ;;  %v617_v56 = vsub.f32 %v609_v52, %v613_v50 }
 0x320   : > { %903 = vmatmul.msk.f32.gmra.mxu2 %vm338_vm3, %v629_v26  ;;  %904 = vmatpush.xpose.msk.msrb.mxu0 %vm338_vm3, %v629_v26 }
 0x321   : > { %923 = vmatpush.xpose.msk.msra.mxu3 %vm338_vm3, %v629_v26 }
 0x324   : > { %905 = vmatpush.xpose.msk.msrb.mxu0 %vm338_vm3, %v628_v22 }
 0x325   : > { %924 = vmatpush.xpose.msk.msra.mxu3 %vm338_vm3, %v628_v22 }
 0x328   : > { %906 = vmatpush.xpose.msk.msrb.mxu0 %vm338_vm3, %v627_v18 }
 0x329   : > { %925 = vmatpush.xpose.msk.msra.mxu3 %vm338_vm3, %v627_v18 }
 0x32c   : > { %907 = vmatpush.xpose.msk.msrb.mxu0 %vm338_vm3, %v626_v14 }
 0x32d   : > { %926 = vmatpush.xpose.msk.msra.mxu3 %vm338_vm3, %v626_v14 }
 0x38b   : > { %v663_v27 = vpop.f32.mrf.mxu2 }
 0x38c   : > { %908 = vmatmul.msk.f32.vlgmr.msrb.gmra.mxu0 %vm338_vm3, %v663_v27 }
 0x393   : > { %v666_v28 = vpop.f32.mrf.mxu2 }
 0x394   : > { %909 = vmatmul.msk.f32.vlgmr.msra.gmra.mxu3 %vm338_vm3, %v666_v28 }
 0x39b   : > { %v669_v29 = vpop.f32.mrf.mxu2 }
 0x39c   : > { %910 = vmatmul.msk.f32.gmra.mxu3 %vm338_vm3, %v669_v29 }
 0x3a3   : > { %v672_v30 = vpop.f32.mrf.mxu2 }
 0x3a4   : > { %911 = vmatmul.msk.f32.gmra.mxu3 %vm338_vm3, %v672_v30 }
 0x409   : > { %v704_v43 = vpop.f32.mrf.mxu0 }
 0x40a   : > { %v716_v48 = vsub.f32 %v614_v44, %v704_v43 }
 0x40c   : > { %v720_v53 = vmul.f32 %v716_v48, %v716_v48 }
 0x40e   : > { %v724_v58 = vsel %vm338_vm3, %v720_v53, 0.0 }
 0x417   : > { %v707_v35 = vpop.f32.mrf.mxu3 }
 0x418   : > { %v717_v45 = vsub.f32 %v615_v42, %v707_v35 }
 0x41a   : > { %v721_v51 = vmul.f32 %v717_v45, %v717_v45 }
 0x41c   : > { %v725_v55 = vsel %vm338_vm3, %v721_v51, 0.0 }
 0x41d   : > { %v726_v61 = vadd.f32 %v725_v55, %v724_v58 }
 0x41f   : > { %v710_v47 = vpop.f32.mrf.mxu3 }
 0x420   : > { %v718_v49 = vsub.f32 %v616_v46, %v710_v47 }
 0x422   : > { %v722_v54 = vmul.f32 %v718_v49, %v718_v49 }
 0x424   : > { %v727_v59 = vsel %vm338_vm3, %v722_v54, 0.0 }
 0x425   : > { %v728_v63 = vadd.f32 %v727_v59, %v726_v61 }
 0x427   : > { %v713_v57 = vpop.f32.mrf.mxu3 }
 0x428   : > { %v719_v60 = vsub.f32 %v617_v56, %v713_v57 }
 0x42a   : > { %v723_v62 = vmul.f32 %v719_v60, %v719_v60 }
 0x42c   : > { %v729_v0 = vsel %vm338_vm3, %v723_v62, 0.0 }
 0x42d   : > { %v730_v1 = vadd.f32 %v729_v0, %v728_v63 }
 0x42f   : > { %731 = vadd.xlane.f32.xlu0 %v730_v1 }
 0x4a2   : > { %v732_v2 = vpop.xlane.xlu0 %731 }
 0x4a3   : > { %v733_v3 = vrot.slane %v732_v2, 4 }
 0x4a5   : > { %v734_v4 = vadd.f32 %v733_v3, %v732_v2 }
 0x4a7   : > { %v735_v5 = vrot.slane %v734_v4, 2 }
 0x4a9   : > { %v736_v6 = vadd.f32 %v735_v5, %v734_v4 }
 0x4ab   : > { %v737_v7 = vrot.slane %v736_v6, 1 }
 0x4ad   : > { %v738_v8 = vadd.f32 %v737_v7, %v736_v6 }
 0x4af   : > { %927 = vpush %v738_v8 }
 0x4e0   : > { %s928_s22 = spop %927 }
 0x4e1   : > { %v740_v9 = vstv %s928_s22 }
 0x4e2   : > { %742 = vst.msk [vmem:[#allocation14] sm:$0x1] %vm741_vm9, %v740_v9 }
 0x4e3 PF: > { %p941_p11 = scmp.eq.s32.totalorder %s1322_s24, 1  ;;  %s752_s19 = sshll.u32 %s1568_s4, 4  ;;  %s753_s19 = int_to_ptr.hbm [resolvable:$true] %s752_s19 }
 0x4e4   : > { %s1256_s16 = smov [#allocation14]  }
 0x4e5   : > { %s750_s14 = sshll.u32 %s1256_s16, 4  ;;  %s751_s14 = int_to_ptr.vmem [resolvable:$true] %s750_s14 }
 0x4e6   : > { %934 = dma.vmem_to_hbm [thread:$0]  (%p941_p11), %s751_s14, 16, %s753_s19, [#allocation10]  }
 0x4e7   : > { %1211 = dma.done.wait (%p941_p11), [#allocation10], 16  }
 0x4e8   : > { %1213 = vsyncadd (%p941_p11), [#allocation10], 4294967280 }
 0x4e9 PF: > { %s22_s0 = sadd.s32 1, %s1244_s0   ;;  %s1578_s17 = smov %s1220_s18 }
 0x4ea   : > { %p19_p3 = scmp.ge.s32.totalorder %s22_s0, 4   ;;  %s1545_s18 = smov 0  }
 0x4eb   : > { %s1579_s19 = smov %s1228_s20  ;;  %s1580_s20 = smov %s1232_s21 }
 0x4ec   : > { %s1581_s21 = smov %s1344_s5  ;;  %s1582_s22 = smov %s1240_s23 }
 0x4ed   : > { %s1583_s23 = smov %s1585_s25  ;;  %21 = sbr.rel (!%p19_p3) target bundleno = 10 (0xa), region = 96 }
 0x4f2   :  { %766 = vsyncpa [#allocation9], 1 }
 0x4f3   :  { %768 = vsyncpa [#allocation9 + $0x1], 1 }
 0x4f4   :  { %769 = vsyncpa [#allocation12], 1 }
 0x4f5   :  { %771 = vsyncpa [#allocation12 + $0x1], 1 }
 0x4f6   :  { %772 = vsyncpa [#allocation10], 1 }
 0x4f7   :  { %774 = vsyncpa [#allocation10 + $0x1], 1 }

</bundles_post_ra>
